<compile_context>
chip_gen: v5e
topology: v5e:2x2
jax: 0.10.0
libtpu: 0.0.40
codegen_flags: <defaults>
</compile_context>

<pallas_src>
import functools

import jax
import jax.numpy as jnp
from jax import lax
from jax.experimental import pallas as pl
from jax.experimental.pallas import tpu as pltpu  # noqa: F401  (not needed at these sizes)


def stocha_policy_kernel(min_log_std, max_log_std, B, T, D, H, A,
                         obs_ref,   # [B, T, D]   batch-first, like PyTorch
                         rnn_ref,   # [D+H+1, H]  rows: Wih | Whh | b_rnn
                         h1_ref,    # [H+1, 2H]   rows: [Wm1 | Ws1] | [bm1 | bs1]
                         h2_ref,    # [2H+3, 2A]  rows: blockdiag(Wm2,Ws2) | b2 | scale | shift
                         out_ref):  # [B, 2A] = concat(action_mean, action_std)
    # ---- unpack packed parameter buffers (static slices) ----
    wih = rnn_ref[0:D, :]                      # [D, H]
    whh = rnn_ref[D:D + H, :]                  # [H, H]
    brnn = rnn_ref[D + H:D + H + 1, :]         # [1, H]  (= b_ih + b_hh)

    w1 = h1_ref[0:H, :]                        # [H, 2H]
    b1 = h1_ref[H:H + 1, :]                    # [1, 2H]

    w2 = h2_ref[0:2 * H, :]                    # [2H, 2A] block-diagonal
    b2 = h2_ref[2 * H:2 * H + 1, :]            # [1, 2A]
    scale = h2_ref[2 * H + 1:2 * H + 2, :]     # [1, 2A]  (high-low)/2 in first A cols
    shift = h2_ref[2 * H + 2:2 * H + 3, :]     # [1, 2A]  (high+low)/2 in first A cols

    # ---- hoisted input projection: one matmul covers all T timesteps ----
    obs2d = obs_ref[...].reshape(B * T, D)     # collapse leading dims (free)
    xh = (jnp.dot(obs2d, wih, preferred_element_type=jnp.float32)
          + brnn).reshape(B, T, H)             # [B, T, H]

    # ---- RNN recurrence, fully unrolled (T static & small):
    #      h_t = tanh(xh[:, t] + h_{t-1} @ Whh)
    h = jnp.zeros((B, H), jnp.float32)
    for t in range(T):
        h = jnp.tanh(xh[:, t, :]
                     + jnp.dot(h, whh, preferred_element_type=jnp.float32))

    # ---- fused mean / log_std heads: two wide matmuls, pre-concatenated ----
    h1 = jnp.maximum(jnp.dot(h, w1, preferred_element_type=jnp.float32) + b1, 0.0)
    pre = jnp.dot(h1, w2, preferred_element_type=jnp.float32) + b2       # [B, 2A]

    # First A columns -> action_mean, last A columns -> action_std.
    col = lax.broadcasted_iota(jnp.int32, pre.shape, 1)
    is_mean = col < A
    mean_out = scale * jnp.tanh(pre) + shift
    std_out = jnp.exp(jnp.clip(pre, min_log_std, max_log_std))
    out_ref[...] = jnp.where(is_mean, mean_out, std_out)


def stocha_policy_forward(obs, rnn_buf, h1_buf, h2_buf,
                          min_log_std, max_log_std):
    """obs: [B, T, D] batch-first (as in PyTorch).  Returns [B, 2*act_dim]."""
    B, T, D = obs.shape
    H = h1_buf.shape[0] - 1
    A = h2_buf.shape[1] // 2

    kernel = functools.partial(stocha_policy_kernel,
                               float(min_log_std), float(max_log_std),
                               B, T, D, H, A)
    # Whole arrays as single VMEM blocks (no grid): total footprint is a few KB.
    return pl.pallas_call(
        kernel,
        out_shape=jax.ShapeDtypeStruct((B, 2 * A), jnp.float32),
    )(obs, rnn_buf, h1_buf, h2_buf)


def init_params(key, obs_dim, hidden, act_dim):
    """Deterministic synthetic parameters.  Weights stored [in, out]."""
    keys = jax.random.split(key, 12)
    s = 0.1
    return {
        # nn.RNN (1 layer, tanh): stored transposed, biases combined.
        "wih": jax.random.normal(keys[0], (obs_dim, hidden), jnp.float32) * s,
        "whh": jax.random.normal(keys[1], (hidden, hidden), jnp.float32) * s,
        "brnn": jax.random.normal(keys[2], (1, hidden), jnp.float32) * s,
        # mean head: Linear(H, H) -> ReLU -> Linear(H, A) -> Identity
        "wm1": jax.random.normal(keys[3], (hidden, hidden), jnp.float32) * s,
        "bm1": jax.random.normal(keys[4], (1, hidden), jnp.float32) * s,
        "wm2": jax.random.normal(keys[5], (hidden, act_dim), jnp.float32) * s,
        "bm2": jax.random.normal(keys[6], (1, act_dim), jnp.float32) * s,
        # log_std head
        "ws1": jax.random.normal(keys[7], (hidden, hidden), jnp.float32) * s,
        "bs1": jax.random.normal(keys[8], (1, hidden), jnp.float32) * s,
        "ws2": jax.random.normal(keys[9], (hidden, act_dim), jnp.float32) * s,
        "bs2": jax.random.normal(keys[10], (1, act_dim), jnp.float32) * s,
    }


def pack_params(p, act_high, act_low):
    """Pack all parameters + action limits into 3 contiguous buffers (once at init)."""
    D, H = p["wih"].shape
    A = p["wm2"].shape[1]

    # [D+H+1, H]: Wih | Whh | b_rnn
    rnn_buf = jnp.concatenate([p["wih"], p["whh"], p["brnn"]], axis=0)

    # [H+1, 2H]: fused first layers of both heads + fused bias
    w1 = jnp.concatenate([p["wm1"], p["ws1"]], axis=1)
    b1 = jnp.concatenate([p["bm1"], p["bs1"]], axis=1)
    h1_buf = jnp.concatenate([w1, b1], axis=0)

    # [2H+3, 2A]: block-diagonal second layers + fused bias + scale/shift rows
    zero = jnp.zeros((H, A), jnp.float32)
    w2 = jnp.concatenate(
        [jnp.concatenate([p["wm2"], zero], axis=1),
         jnp.concatenate([zero, p["ws2"]], axis=1)], axis=0)
    b2 = jnp.concatenate([p["bm2"], p["bs2"]], axis=1)
    pad = jnp.zeros((1, A), jnp.float32)
    scale = jnp.concatenate([(act_high - act_low) * 0.5, pad], axis=1)
    shift = jnp.concatenate([(act_high + act_low) * 0.5, pad], axis=1)
    h2_buf = jnp.concatenate([w2, b2, scale, shift], axis=0)

    return rnn_buf, h1_buf, h2_buf


def reference_forward(obs, p, act_high, act_low, min_log_std, max_log_std):
    """Pure-JAX reference matching the PyTorch forward."""
    B, T, _ = obs.shape
    hp = jax.lax.Precision.HIGHEST
    H = p["whh"].shape[0]
    h = jnp.zeros((B, H), jnp.float32)
    for t in range(T):
        h = jnp.tanh(jnp.dot(obs[:, t, :], p["wih"], precision=hp)
                     + jnp.dot(h, p["whh"], precision=hp) + p["brnn"])
    hm = jax.nn.relu(jnp.dot(h, p["wm1"], precision=hp) + p["bm1"])
    mean_pre = jnp.dot(hm, p["wm2"], precision=hp) + p["bm2"]
    action_mean = ((act_high - act_low) * 0.5 * jnp.tanh(mean_pre)
                   + (act_high + act_low) * 0.5)
    hs = jax.nn.relu(jnp.dot(h, p["ws1"], precision=hp) + p["bs1"])
    log_std = jnp.clip(jnp.dot(hs, p["ws2"], precision=hp) + p["bs2"],
                       min_log_std, max_log_std)
    return jnp.concatenate([action_mean, jnp.exp(log_std)], axis=-1)


if __name__ == "__main__":
    # Small shapes consistent with the module: obs [B, T, obs_dim].
    B, T, OBS_DIM = 2, 8, 8
    HIDDEN = 32          # hidden_sizes = (32, 32) -> pi_sizes = [32, 32, act_dim]
    ACT_DIM = 4
    MIN_LOG_STD, MAX_LOG_STD = -20.0, 0.5

    key = jax.random.PRNGKey(0)
    k_obs, k_par = jax.random.split(key)

    obs = jax.random.normal(k_obs, (B, T, OBS_DIM), jnp.float32)
    raw = init_params(k_par, OBS_DIM, HIDDEN, ACT_DIM)

    act_high = jnp.full((1, ACT_DIM), 2.0, jnp.float32)
    act_low = jnp.full((1, ACT_DIM), -2.0, jnp.float32)

    rnn_buf, h1_buf, h2_buf = pack_params(raw, act_high, act_low)

    out = stocha_policy_forward(obs, rnn_buf, h1_buf, h2_buf,
                                MIN_LOG_STD, MAX_LOG_STD)
    out = jax.block_until_ready(out)

    assert out.shape == (B, 2 * ACT_DIM)
    assert bool(jnp.all(jnp.isfinite(out)))

    ref = reference_forward(obs, raw, act_high, act_low,
                            MIN_LOG_STD, MAX_LOG_STD)
    assert bool(jnp.allclose(out, ref, rtol=5e-3, atol=5e-3))

    print("KERNEL_OK")
</pallas_src>

<mosaic_0001>
module attributes {stable_mosaic.version = 11 : i64} {
  func.func @stocha_policy_kernel(%arg0: memref<2x8x8xf32, #tpu.memory_space<vmem>>, %arg1: memref<41x32xf32, #tpu.memory_space<vmem>>, %arg2: memref<33x64xf32, #tpu.memory_space<vmem>>, %arg3: memref<67x8xf32, #tpu.memory_space<vmem>>, %arg4: memref<2x8xf32, #tpu.memory_space<vmem>>) attributes {dimension_semantics = [], scalar_prefetch = 0 : i64, scratch_operands = 0 : i64, tpu.core_type = #tpu.core_type<tc>} {
    %c0 = arith.constant 0 : index
    %c0_0 = arith.constant 0 : index
    %0 = vector.load %arg1[%c0, %c0_0] : memref<41x32xf32, #tpu.memory_space<vmem>>, vector<8x32xf32>
    %c8 = arith.constant 8 : index
    %c0_1 = arith.constant 0 : index
    %1 = vector.load %arg1[%c8, %c0_1] : memref<41x32xf32, #tpu.memory_space<vmem>>, vector<32x32xf32>
    %c40 = arith.constant 40 : index
    %c0_2 = arith.constant 0 : index
    %2 = vector.load %arg1[%c40, %c0_2] : memref<41x32xf32, #tpu.memory_space<vmem>>, vector<1x32xf32>
    %c0_3 = arith.constant 0 : index
    %c0_4 = arith.constant 0 : index
    %3 = vector.load %arg2[%c0_3, %c0_4] : memref<33x64xf32, #tpu.memory_space<vmem>>, vector<32x64xf32>
    %c32 = arith.constant 32 : index
    %c0_5 = arith.constant 0 : index
    %4 = vector.load %arg2[%c32, %c0_5] : memref<33x64xf32, #tpu.memory_space<vmem>>, vector<1x64xf32>
    %c0_6 = arith.constant 0 : index
    %c0_7 = arith.constant 0 : index
    %5 = vector.load %arg3[%c0_6, %c0_7] : memref<67x8xf32, #tpu.memory_space<vmem>>, vector<64x8xf32>
    %c64 = arith.constant 64 : index
    %c0_8 = arith.constant 0 : index
    %6 = vector.load %arg3[%c64, %c0_8] : memref<67x8xf32, #tpu.memory_space<vmem>>, vector<1x8xf32>
    %c65 = arith.constant 65 : index
    %c0_9 = arith.constant 0 : index
    %7 = vector.load %arg3[%c65, %c0_9] : memref<67x8xf32, #tpu.memory_space<vmem>>, vector<1x8xf32>
    %c66 = arith.constant 66 : index
    %c0_10 = arith.constant 0 : index
    %8 = vector.load %arg3[%c66, %c0_10] : memref<67x8xf32, #tpu.memory_space<vmem>>, vector<1x8xf32>
    %c0_11 = arith.constant 0 : index
    %c0_12 = arith.constant 0 : index
    %c0_13 = arith.constant 0 : index
    %9 = vector.load %arg0[%c0_11, %c0_12, %c0_13] : memref<2x8x8xf32, #tpu.memory_space<vmem>>, vector<2x8x8xf32>
    %10 = vector.shape_cast %9 : vector<2x8x8xf32> to vector<16x8xf32>
    %cst = arith.constant dense<0.000000e+00> : vector<16x32xf32>
    %11 = tpu.matmul %10, %0, %cst {dimension_numbers = #tpu.dot_dimension_numbers<[1], [0], [0], [1], [0, 0, 1, 1], [], []>} : vector<16x8xf32>, vector<8x32xf32>, vector<16x32xf32> -> vector<16x32xf32>
    %12 = vector.broadcast %2 : vector<1x32xf32> to vector<16x32xf32>
    %13 = arith.addf %11, %12 : vector<16x32xf32>
    %14 = vector.shape_cast %13 : vector<16x32xf32> to vector<2x8x32xf32>
    %cst_14 = arith.constant 0.000000e+00 : f32
    %15 = vector.broadcast %cst_14 : f32 to vector<2x32xf32>
    %16 = vector.extract_strided_slice %14 {offsets = [0, 0, 0], sizes = [2, 1, 32], strides = [1, 1, 1]} : vector<2x8x32xf32> to vector<2x1x32xf32>
    %17 = vector.shape_cast %16 : vector<2x1x32xf32> to vector<2x32xf32>
    %cst_15 = arith.constant dense<0.000000e+00> : vector<2x32xf32>
    %18 = tpu.matmul %15, %1, %cst_15 {dimension_numbers = #tpu.dot_dimension_numbers<[1], [0], [0], [1], [0, 0, 1, 1], [], []>} : vector<2x32xf32>, vector<32x32xf32>, vector<2x32xf32> -> vector<2x32xf32>
    %19 = arith.addf %17, %18 : vector<2x32xf32>
    %20 = math.tanh %19 : vector<2x32xf32>
    %21 = vector.extract_strided_slice %14 {offsets = [0, 1, 0], sizes = [2, 1, 32], strides = [1, 1, 1]} : vector<2x8x32xf32> to vector<2x1x32xf32>
    %22 = vector.shape_cast %21 : vector<2x1x32xf32> to vector<2x32xf32>
    %cst_16 = arith.constant dense<0.000000e+00> : vector<2x32xf32>
    %23 = tpu.matmul %20, %1, %cst_16 {dimension_numbers = #tpu.dot_dimension_numbers<[1], [0], [0], [1], [0, 0, 1, 1], [], []>} : vector<2x32xf32>, vector<32x32xf32>, vector<2x32xf32> -> vector<2x32xf32>
    %24 = arith.addf %22, %23 : vector<2x32xf32>
    %25 = math.tanh %24 : vector<2x32xf32>
    %26 = vector.extract_strided_slice %14 {offsets = [0, 2, 0], sizes = [2, 1, 32], strides = [1, 1, 1]} : vector<2x8x32xf32> to vector<2x1x32xf32>
    %27 = vector.shape_cast %26 : vector<2x1x32xf32> to vector<2x32xf32>
    %cst_17 = arith.constant dense<0.000000e+00> : vector<2x32xf32>
    %28 = tpu.matmul %25, %1, %cst_17 {dimension_numbers = #tpu.dot_dimension_numbers<[1], [0], [0], [1], [0, 0, 1, 1], [], []>} : vector<2x32xf32>, vector<32x32xf32>, vector<2x32xf32> -> vector<2x32xf32>
    %29 = arith.addf %27, %28 : vector<2x32xf32>
    %30 = math.tanh %29 : vector<2x32xf32>
    %31 = vector.extract_strided_slice %14 {offsets = [0, 3, 0], sizes = [2, 1, 32], strides = [1, 1, 1]} : vector<2x8x32xf32> to vector<2x1x32xf32>
    %32 = vector.shape_cast %31 : vector<2x1x32xf32> to vector<2x32xf32>
    %cst_18 = arith.constant dense<0.000000e+00> : vector<2x32xf32>
    %33 = tpu.matmul %30, %1, %cst_18 {dimension_numbers = #tpu.dot_dimension_numbers<[1], [0], [0], [1], [0, 0, 1, 1], [], []>} : vector<2x32xf32>, vector<32x32xf32>, vector<2x32xf32> -> vector<2x32xf32>
    %34 = arith.addf %32, %33 : vector<2x32xf32>
    %35 = math.tanh %34 : vector<2x32xf32>
    %36 = vector.extract_strided_slice %14 {offsets = [0, 4, 0], sizes = [2, 1, 32], strides = [1, 1, 1]} : vector<2x8x32xf32> to vector<2x1x32xf32>
    %37 = vector.shape_cast %36 : vector<2x1x32xf32> to vector<2x32xf32>
    %cst_19 = arith.constant dense<0.000000e+00> : vector<2x32xf32>
    %38 = tpu.matmul %35, %1, %cst_19 {dimension_numbers = #tpu.dot_dimension_numbers<[1], [0], [0], [1], [0, 0, 1, 1], [], []>} : vector<2x32xf32>, vector<32x32xf32>, vector<2x32xf32> -> vector<2x32xf32>
    %39 = arith.addf %37, %38 : vector<2x32xf32>
    %40 = math.tanh %39 : vector<2x32xf32>
    %41 = vector.extract_strided_slice %14 {offsets = [0, 5, 0], sizes = [2, 1, 32], strides = [1, 1, 1]} : vector<2x8x32xf32> to vector<2x1x32xf32>
    %42 = vector.shape_cast %41 : vector<2x1x32xf32> to vector<2x32xf32>
    %cst_20 = arith.constant dense<0.000000e+00> : vector<2x32xf32>
    %43 = tpu.matmul %40, %1, %cst_20 {dimension_numbers = #tpu.dot_dimension_numbers<[1], [0], [0], [1], [0, 0, 1, 1], [], []>} : vector<2x32xf32>, vector<32x32xf32>, vector<2x32xf32> -> vector<2x32xf32>
    %44 = arith.addf %42, %43 : vector<2x32xf32>
    %45 = math.tanh %44 : vector<2x32xf32>
    %46 = vector.extract_strided_slice %14 {offsets = [0, 6, 0], sizes = [2, 1, 32], strides = [1, 1, 1]} : vector<2x8x32xf32> to vector<2x1x32xf32>
    %47 = vector.shape_cast %46 : vector<2x1x32xf32> to vector<2x32xf32>
    %cst_21 = arith.constant dense<0.000000e+00> : vector<2x32xf32>
    %48 = tpu.matmul %45, %1, %cst_21 {dimension_numbers = #tpu.dot_dimension_numbers<[1], [0], [0], [1], [0, 0, 1, 1], [], []>} : vector<2x32xf32>, vector<32x32xf32>, vector<2x32xf32> -> vector<2x32xf32>
    %49 = arith.addf %47, %48 : vector<2x32xf32>
    %50 = math.tanh %49 : vector<2x32xf32>
    %51 = vector.extract_strided_slice %14 {offsets = [0, 7, 0], sizes = [2, 1, 32], strides = [1, 1, 1]} : vector<2x8x32xf32> to vector<2x1x32xf32>
    %52 = vector.shape_cast %51 : vector<2x1x32xf32> to vector<2x32xf32>
    %cst_22 = arith.constant dense<0.000000e+00> : vector<2x32xf32>
    %53 = tpu.matmul %50, %1, %cst_22 {dimension_numbers = #tpu.dot_dimension_numbers<[1], [0], [0], [1], [0, 0, 1, 1], [], []>} : vector<2x32xf32>, vector<32x32xf32>, vector<2x32xf32> -> vector<2x32xf32>
    %54 = arith.addf %52, %53 : vector<2x32xf32>
    %55 = math.tanh %54 : vector<2x32xf32>
    %cst_23 = arith.constant dense<0.000000e+00> : vector<2x64xf32>
    %56 = tpu.matmul %55, %3, %cst_23 {dimension_numbers = #tpu.dot_dimension_numbers<[1], [0], [0], [1], [0, 0, 1, 1], [], []>} : vector<2x32xf32>, vector<32x64xf32>, vector<2x64xf32> -> vector<2x64xf32>
    %57 = vector.broadcast %4 : vector<1x64xf32> to vector<2x64xf32>
    %58 = arith.addf %56, %57 : vector<2x64xf32>
    %cst_24 = arith.constant 0.000000e+00 : f32
    %59 = vector.broadcast %cst_24 : f32 to vector<2x64xf32>
    %60 = arith.maximumf %58, %59 : vector<2x64xf32>
    %cst_25 = arith.constant dense<0.000000e+00> : vector<2x8xf32>
    %61 = tpu.matmul %60, %5, %cst_25 {dimension_numbers = #tpu.dot_dimension_numbers<[1], [0], [0], [1], [0, 0, 1, 1], [], []>} : vector<2x64xf32>, vector<64x8xf32>, vector<2x8xf32> -> vector<2x8xf32>
    %62 = vector.broadcast %6 : vector<1x8xf32> to vector<2x8xf32>
    %63 = arith.addf %61, %62 : vector<2x8xf32>
    %64 = tpu.iota {dimensions = array<i32: 1>} : vector<2x8xi32>
    %c4_i32 = arith.constant 4 : i32
    %65 = vector.broadcast %c4_i32 : i32 to vector<2x8xi32>
    %66 = arith.cmpi slt, %64, %65 : vector<2x8xi32>
    %67 = math.tanh %63 : vector<2x8xf32>
    %68 = vector.broadcast %7 : vector<1x8xf32> to vector<2x8xf32>
    %69 = arith.mulf %68, %67 : vector<2x8xf32>
    %70 = vector.broadcast %8 : vector<1x8xf32> to vector<2x8xf32>
    %71 = arith.addf %69, %70 : vector<2x8xf32>
    %cst_26 = arith.constant -2.000000e+01 : f32
    %cst_27 = arith.constant 5.000000e-01 : f32
    %72 = vector.broadcast %cst_26 : f32 to vector<2x8xf32>
    %73 = arith.maximumf %72, %63 : vector<2x8xf32>
    %74 = vector.broadcast %cst_27 : f32 to vector<2x8xf32>
    %75 = arith.minimumf %74, %73 : vector<2x8xf32>
    %76 = math.exp %75 : vector<2x8xf32>
    %77 = arith.select %66, %71, %76 : vector<2x8xi1>, vector<2x8xf32>
    %c0_28 = arith.constant 0 : index
    %c0_29 = arith.constant 0 : index
    %78 = vector.load %arg4[%c0_28, %c0_29] : memref<2x8xf32, #tpu.memory_space<vmem>>, vector<2x8xf32>
    tpu.vector_store %arg4[%c0_28, %c0_29], %77 {strides = array<i32>} : memref<2x8xf32, #tpu.memory_space<vmem>>, vector<2x8xf32>,
    return
  }
}

</mosaic_0001>

<bundles_post_ra>
// kernel: tpu_custom_call.1
= control target key start
LH: loop header
LB: loop body
LE: loop exit
PB: predicated region body
PF: predicated region fallthrough
CT: control target
= control target key end

     0   :  { %vm43_vm0 = vcmask 64512   ;;  %s660_s0 = inlined_call_operand.vmem [shape: f32[2,8,8], index: 0, kind: input, shape index: {}]   ;;  %s661_s1 = inlined_call_operand.vmem [shape: f32[41,32], index: 1, kind: input, shape index: {}]   ;;  %s662_s2 = inlined_call_operand.vmem [shape: f32[33,64], index: 2, kind: input, shape index: {}]   ;;  %s663_s3 = inlined_call_operand.vmem [shape: f32[67,8], index: 3, kind: input, shape index: {}]   ;;  %s664_s4 = inlined_call_operand.hbm [shape: f32[2,8], index: 4, kind: output, shape index: {}]  }
   0x1   :  { %v18_v0 = vld [vmem:[%s661_s1] sm:$0xff]  ;;  %v21_v3 = vld [vmem:[%s661_s1 + $0x18] sm:$0xff]  ;;  %v20_v4 = vld [vmem:[%s661_s1 + $0x10] sm:$0xff] }
   0x2   :  { %v22_v1 = vld [vmem:[%s661_s1 + $0x20] sm:$0xff]  ;;  %65 = vmatpush.msra.mxu0 %v18_v0  ;;  %v19_v5 = vld [vmem:[%s661_s1 + $0x8] sm:$0xff] }
   0x3   :  { %v40_v2 = vld [vmem:[%s660_s0] sm:$0xff]  ;;  %89 = vmatpush.msra.mxu1 %v22_v1  ;;  %124 = vmatpush.msra.mxu2 %v22_v1 }
   0x4   :  { %440 = vmatmul.msk.f32.vlgmr.msra.gmra.mxu0 %vm43_vm0, %v40_v2  ;;  %266 = vmatpush.msra.mxu3 %v22_v1 }
   0x5   :  { %90 = vmatpush.msra.mxu1 %v21_v3  ;;  %158 = vmatpush.msrb.mxu0 %v22_v1 }
   0x6   :  { %125 = vmatpush.msra.mxu2 %v21_v3 }
   0x7   :  { %9 = vsyncpa [#allocation3], 0  ;;  %91 = vmatpush.msra.mxu1 %v20_v4  ;;  %159 = vmatpush.msrb.mxu0 %v21_v3  ;;  %v41_v6 = vld [vmem:[%s660_s0 + $0x8] sm:$0xff]  ;;  %v520_v7 = vmov 0.0   ;;  %vm108_vm1 = vcmask 1041409   ;;  %vm73_vm2 = vcmask 261120  }
   0x8   :  { %126 = vmatpush.msra.mxu2 %v20_v4  ;;  %267 = vmatpush.msra.mxu3 %v21_v3  ;;  %v453_v9 = vld [vmem:[%s661_s1 + $0x28] ss:$0 sm:$0xff]  ;;  %vm385_vm3 = vcmask 523264   ;;  %s521_s6 = smov [#allocation2]   ;;  %s431_s10 = sshll.u32 %s664_s4, 4  ;;  %vm422_vm5 = vcmask 58368   ;;  %s432_s10 = int_to_ptr.hbm [resolvable:$true] %s431_s10 }
   0x9   :  { %92 = vmatpush.msra.mxu1 %v19_v5  ;;  %160 = vmatpush.msrb.mxu0 %v20_v4  ;;  %s429_s7 = sshll.u32 %s521_s6, 4  ;;  %s430_s7 = int_to_ptr.vmem [resolvable:$true] %s429_s7 }
   0xa   :  { %93 = vmatmul.f32.vlgmr.msra.gmra.mxu1 %v520_v7  ;;  %127 = vmatpush.msra.mxu2 %v19_v5 }
   0xb   :  { %161 = vmatpush.msrb.mxu0 %v19_v5  ;;  %194 = vmatpush.msrb.mxu1 %v22_v1 }
   0xc   :  { %441 = vmatmul.msk.f32.gmra.mxu0 %vm43_vm0, %v41_v6  ;;  %230 = vmatpush.msrb.mxu2 %v22_v1 }
   0xd   :  { %195 = vmatpush.msrb.mxu1 %v21_v3  ;;  %268 = vmatpush.msra.mxu3 %v20_v4 }
   0xe   :  { %231 = vmatpush.msrb.mxu2 %v21_v3  ;;  %302 = vmatpush.msra.mxu0 %v22_v1 }
   0xf   :  { %196 = vmatpush.msrb.mxu1 %v20_v4  ;;  %269 = vmatpush.msra.mxu3 %v19_v5 }
  0x10   :  { %232 = vmatpush.msrb.mxu2 %v20_v4  ;;  %303 = vmatpush.msra.mxu0 %v21_v3 }
  0x11   :  { %197 = vmatpush.msrb.mxu1 %v19_v5 }
  0x12   :  { %233 = vmatpush.msrb.mxu2 %v19_v5  ;;  %304 = vmatpush.msra.mxu0 %v20_v4 }
  0x13   :  { %338 = vmatpush.msra.mxu1 %v22_v1 }
  0x14   :  { %305 = vmatpush.msra.mxu0 %v19_v5 }
  0x15   :  { %339 = vmatpush.msra.mxu1 %v21_v3 }
  0x17   :  { %340 = vmatpush.msra.mxu1 %v20_v4 }
  0x19   :  { %341 = vmatpush.msra.mxu1 %v19_v5 }
  0x81   :  { %v67_v8 = vpop.f32.mrf.mxu0 }
  0x82   :  { %v573_v13 = vadd.f32 %v453_v9, %v67_v8 }
  0x87   :  { %v94_v10 = vpop.f32.mrf.mxu1 }
  0x88   :  { %v98_v11 = vrot.slane %v94_v10, 1  ;;  %v101_v15 = vadd.f32 %v94_v10, %v573_v13 }
  0x89   :  { %v70_v12 = vpop.f32.mrf.mxu0 }
  0x8a   :  { %v575_v14 = vadd.f32 %v453_v9, %v70_v12 }
  0x8c   :  { %v102_v16 = vadd.f32 %v98_v11, %v575_v14 }
  0x8e   :  { %458 = vtanh.f32 %v102_v16 }
  0x8f   :  { %460 = vtanh.f32 %v101_v15 }
  0x94   :  { %v459_v17 = vpop.eup %458 }
  0x95   :  { %v107_v18 = vrot.slane %v459_v17, 7  ;;  %v461_v19 = vpop.eup %460  ;;  %v27_v17 = vld [vmem:[%s662_s2 + $0x18] sm:$0xff] }
  0x97   :  { %v109_v20 = vsel %vm108_vm1, %v107_v18, %v461_v19  ;;  %v26_v18 = vld [vmem:[%s662_s2 + $0x10] sm:$0xff]  ;;  %v25_v19 = vld [vmem:[%s662_s2 + $0x8] sm:$0xff] }
  0x98   :  { %442 = vmatmul.msk.f32.vlgmr.msra.gmra.mxu2 %vm73_vm2, %v109_v20  ;;  %v24_v20 = vld [vmem:[%s662_s2] sm:$0xff] }
  0x99   :  { %375 = vmatpush.msra.mxu2 %v27_v17 }
  0x9b   :  { %376 = vmatpush.msra.mxu2 %v26_v18 }
  0x9d   :  { %377 = vmatpush.msra.mxu2 %v25_v19 }
  0x9f   :  { %378 = vmatpush.msra.mxu2 %v24_v20 }
 0x11b   :  { %v129_v21 = vpop.f32.mrf.mxu2 }
 0x11c   :  { %v133_v22 = vrot.slane %v129_v21, 7  ;;  %v137_v24 = vadd.f32 %v129_v21, %v575_v14  ;;  %v36_v21 = vld [vmem:[%s663_s3 + $0x38] sm:$0xff] }
 0x11d   :  { %397 = vmatpush.msrb.mxu3 %v36_v21 }
 0x11e   :  { %v136_v23 = vadd.f32 %v133_v22, %v573_v13  ;;  %v35_v22 = vld [vmem:[%s663_s3 + $0x30] sm:$0xff] }
 0x11f   :  { %398 = vmatpush.msrb.mxu3 %v35_v22 }
 0x120   :  { %462 = vtanh.f32 %v136_v23  ;;  %v34_v23 = vld [vmem:[%s663_s3 + $0x28] sm:$0xff] }
 0x121   :  { %464 = vtanh.f32 %v137_v24  ;;  %v33_v24 = vld [vmem:[%s663_s3 + $0x20] sm:$0xff]  ;;  %399 = vmatpush.msrb.mxu3 %v34_v23 }
 0x123   :  { %400 = vmatpush.msrb.mxu3 %v33_v24 }
 0x126   :  { %v463_v25 = vpop.eup %462 }
 0x127   :  { %v142_v26 = vrot.slane %v463_v25, 1  ;;  %v465_v27 = vpop.eup %464  ;;  %v32_v25 = vld [vmem:[%s663_s3 + $0x18] sm:$0xff] }
 0x128   :  { %401 = vmatpush.msrb.mxu3 %v32_v25 }
 0x129   :  { %v143_v28 = vsel %vm108_vm1, %v465_v27, %v142_v26 }
 0x12a   :  { %443 = vmatmul.msk.f32.vlgmr.msrb.gmra.mxu0 %vm73_vm2, %v143_v28 }
 0x1a7   :  { %v163_v29 = vpop.f32.mrf.mxu0 }
 0x1a8   :  { %v167_v30 = vrot.slane %v163_v29, 6  ;;  %v168_v31 = vrot.slane %v163_v29, 7 }
 0x1aa   :  { %v171_v32 = vadd.f32 %v167_v30, %v573_v13  ;;  %v172_v33 = vadd.f32 %v168_v31, %v575_v14 }
 0x1ac   :  { %466 = vtanh.f32 %v171_v32 }
 0x1ad   :  { %468 = vtanh.f32 %v172_v33 }
 0x1b2   :  { %v467_v34 = vpop.eup %466 }
 0x1b3   :  { %v469_v35 = vpop.eup %468  ;;  %v177_v36 = vrot.slane %v467_v34, 2 }
 0x1b4   :  { %v178_v37 = vrot.slane %v469_v35, 1 }
 0x1b6   :  { %v179_v38 = vsel %vm108_vm1, %v178_v37, %v177_v36  ;;  %v31_v36 = vld [vmem:[%s663_s3 + $0x10] sm:$0xff]  ;;  %v454_v37 = vld [vmem:[%s662_s2 + $0x20] ss:$0 sm:$0xff] }
 0x1b7   :  { %444 = vmatmul.msk.f32.vlgmr.msrb.gmra.mxu1 %vm73_vm2, %v179_v38  ;;  %402 = vmatpush.msrb.mxu3 %v31_v36 }
 0x234   :  { %v199_v39 = vpop.f32.mrf.mxu1 }
 0x235   :  { %v203_v40 = vrot.slane %v199_v39, 5  ;;  %v204_v41 = vrot.slane %v199_v39, 6 }
 0x237   :  { %v207_v42 = vadd.f32 %v203_v40, %v573_v13  ;;  %v208_v43 = vadd.f32 %v204_v41, %v575_v14  ;;  %v455_v41 = vld [vmem:[%s663_s3 + $0x40] ss:$0 sm:$0xff] }
 0x239   :  { %470 = vtanh.f32 %v207_v42 }
 0x23a   :  { %472 = vtanh.f32 %v208_v43 }
 0x23f   :  { %v471_v44 = vpop.eup %470 }
 0x240   :  { %v473_v45 = vpop.eup %472  ;;  %v213_v46 = vrot.slane %v471_v44, 3 }
 0x241   :  { %v214_v47 = vrot.slane %v473_v45, 2 }
 0x243   :  { %v215_v48 = vsel %vm108_vm1, %v214_v47, %v213_v46  ;;  %v409_v46 = vlaneseq  ;;  %v456_v47 = vld [vmem:[%s663_s3 + $0x41] ss:$0 sm:$0xff] }
 0x244   :  { %445 = vmatmul.msk.f32.vlgmr.msrb.gmra.mxu2 %vm73_vm2, %v215_v48 }
 0x2c7   :  { %v235_v49 = vpop.f32.mrf.mxu2 }
 0x2c8   :  { %v239_v50 = vrot.slane %v235_v49, 4  ;;  %v240_v51 = vrot.slane %v235_v49, 5 }
 0x2ca   :  { %v243_v52 = vadd.f32 %v239_v50, %v573_v13  ;;  %v244_v53 = vadd.f32 %v240_v51, %v575_v14  ;;  %v410_v50 = vand.u32 127, %v409_v46 }
 0x2cc   :  { %474 = vtanh.f32 %v243_v52  ;;  %v457_v52 = vld [vmem:[%s663_s3 + $0x42] ss:$0 sm:$0xff]  ;;  %vm411_vm4 = vcmp.lt.s32.totalorder %v410_v50, 4 }
 0x2cd   :  { %476 = vtanh.f32 %v244_v53 }
 0x2d2   :  { %v475_v54 = vpop.eup %474 }
 0x2d3   :  { %v477_v55 = vpop.eup %476  ;;  %v249_v56 = vrot.slane %v475_v54, 4 }
 0x2d4   :  { %v250_v57 = vrot.slane %v477_v55, 3 }
 0x2d6   :  { %v251_v58 = vsel %vm108_vm1, %v250_v57, %v249_v56 }
 0x2d7   :  { %446 = vmatmul.msk.f32.vlgmr.msra.gmra.mxu3 %vm73_vm2, %v251_v58 }
 0x35a   :  { %v271_v59 = vpop.f32.mrf.mxu3 }
 0x35b   :  { %v275_v60 = vrot.slane %v271_v59, 3  ;;  %v276_v61 = vrot.slane %v271_v59, 4 }
 0x35d   :  { %v279_v62 = vadd.f32 %v275_v60, %v573_v13  ;;  %v280_v63 = vadd.f32 %v276_v61, %v575_v14 }
 0x35f   :  { %478 = vtanh.f32 %v279_v62 }
 0x360   :  { %480 = vtanh.f32 %v280_v63 }
 0x365   :  { %v479_v0 = vpop.eup %478 }
 0x366   :  { %v481_v1 = vpop.eup %480  ;;  %v285_v2 = vrot.slane %v479_v0, 5 }
 0x367   :  { %v286_v3 = vrot.slane %v481_v1, 4 }
 0x369   :  { %v287_v4 = vsel %vm108_vm1, %v286_v3, %v285_v2 }
 0x36a   :  { %447 = vmatmul.msk.f32.vlgmr.msra.gmra.mxu0 %vm73_vm2, %v287_v4 }
 0x3e7   :  { %v307_v5 = vpop.f32.mrf.mxu0 }
 0x3e8   :  { %v311_v6 = vrot.slane %v307_v5, 2  ;;  %v312_v7 = vrot.slane %v307_v5, 3 }
 0x3ea   :  { %v315_v8 = vadd.f32 %v311_v6, %v573_v13  ;;  %v316_v9 = vadd.f32 %v312_v7, %v575_v14 }
 0x3ec   :  { %482 = vtanh.f32 %v315_v8 }
 0x3ed   :  { %484 = vtanh.f32 %v316_v9 }
 0x3f2   :  { %v483_v10 = vpop.eup %482 }
 0x3f3   :  { %v485_v11 = vpop.eup %484  ;;  %v321_v12 = vrot.slane %v483_v10, 6 }
 0x3f4   :  { %v322_v15 = vrot.slane %v485_v11, 5 }
 0x3f6   :  { %v323_v16 = vsel %vm108_vm1, %v322_v15, %v321_v12 }
 0x3f7   :  { %448 = vmatmul.msk.f32.vlgmr.msra.gmra.mxu1 %vm73_vm2, %v323_v16 }
 0x474   :  { %v343_v26 = vpop.f32.mrf.mxu1 }
 0x475   :  { %v347_v27 = vrot.slane %v343_v26, 1  ;;  %v348_v28 = vrot.slane %v343_v26, 2 }
 0x477   :  { %v351_v29 = vadd.f32 %v347_v27, %v573_v13  ;;  %v352_v30 = vadd.f32 %v348_v28, %v575_v14  ;;  %v30_v13 = vld [vmem:[%s663_s3 + $0x8] sm:$0xff]  ;;  %v29_v14 = vld [vmem:[%s663_s3] sm:$0xff] }
 0x478   :  { %403 = vmatpush.msrb.mxu3 %v30_v13 }
 0x479   :  { %486 = vtanh.f32 %v351_v29 }
 0x47a   :  { %488 = vtanh.f32 %v352_v30  ;;  %404 = vmatpush.msrb.mxu3 %v29_v14 }
 0x47f   :  { %v487_v31 = vpop.eup %486 }
 0x480   :  { %v489_v32 = vpop.eup %488  ;;  %v358_v33 = vrot.slane %v487_v31, 7 }
 0x481   :  { %v359_v34 = vrot.slane %v489_v32, 6 }
 0x483   :  { %v360_v35 = vsel %vm108_vm1, %v359_v34, %v358_v33 }
 0x484   :  { %449 = vmatmul.msk.f32.vlgmr.msra.gmra.mxu2 %vm73_vm2, %v360_v35 }
 0x507   :  { %v380_v38 = vpop.f32.mrf.mxu2 }
 0x508   :  { %v381_v39 = vadd.f32 %v454_v37, %v380_v38 }
 0x50a   :  { %v383_v40 = vmax.f32 %v381_v39, 0.0 }
 0x50c   :  { %450 = vmatmul.msk.f32.vlgmr.msrb.gmra.mxu3 %vm385_vm3, %v383_v40 }
 0x58f   :  { %v406_v42 = vpop.f32.mrf.mxu3 }
 0x590   :  { %v407_v43 = vadd.f32 %v455_v41, %v406_v42 }
 0x592   :  { %490 = vtanh.f32 %v407_v43  ;;  %v417_v44 = vmax.f32 %v407_v43, -20.0 }
 0x594   :  { %v418_v45 = vmin.f32 %v417_v44, 0.5 }
 0x596   :  { %v419_v48 = vmul.f32 1.442695, %v418_v45 }
 0x598   :  { %v491_v49 = vpop.eup %490  ;;  %492 = vpow2.f32 %v419_v48 }
 0x599   :  { %v414_v51 = vmul.f32 %v491_v49, %v456_v47 }
 0x59b   :  { %v416_v53 = vadd.f32 %v457_v52, %v414_v51 }
 0x59e   :  { %v493_v54 = vpop.eup %492 }
 0x59f   :  { %v421_v55 = vsel %vm411_vm4, %v416_v53, %v493_v54 }
 0x5a0   :  { %423 = vst.msk [vmem:[#allocation2] sm:$0x3] %vm422_vm5, %v421_v55 }
 0x5a1   :  { %434 = dma.vmem_to_hbm [thread:$0]  %s430_s7, 32, %s432_s10, [#allocation3]  }
 0x5a2   :  { %518 = dma.done.wait [#allocation3], 32  }
 0x5a3   :  { %519 = vsyncadd [#allocation3], 4294967264 }
 0x5a4   :  { %439 = vsyncpa [#allocation3], 1 }

</bundles_post_ra>
